<compile_context>
chip_gen: v6e
topology: v6e:2x2x1
jax: 0.10.0
libtpu: 0.0.40
codegen_flags: <defaults>
</compile_context>

<pallas_src>
from functools import partial

import jax
import jax.numpy as jnp
from jax.experimental import pallas as pl
from jax.experimental.pallas import tpu as pltpu


def _round_up(x, m):
    return ((x + m - 1) // m) * m


def _paired_bitonic_sort(mat, half):
    """Sort rows [0, half) and rows [half, 2*half) of `mat` independently
    (ascending, per column) with one full-tile bitonic network.

    `half` must be a power of two.  Partner rows (index i ^ j) are fetched with
    static sublane rotations (pltpu.roll -> XLU); the compare-exchange is
    min/max/select on whole (2*half, L) tiles.  Stage masks depend only on the
    row index, so they are built from a (2*half, 1) iota and broadcast across
    lanes by the selects (minimal VPU work).  Because every partner i ^ j with
    j < half stays inside its own half, one pass sorts both halves at once.
    """
    n2 = mat.shape[0]
    assert n2 == 2 * half and (half & (half - 1)) == 0
    if half == 1:
        return mat
    row = jax.lax.broadcasted_iota(jnp.int32, (n2, 1), 0)
    k = 2
    while k <= half:
        k_eff = k & (half - 1)          # == k for k < half, 0 for the final merge
        j = k // 2
        while j >= 1:
            bit_j = (row & j) != 0
            keep_min = bit_j == ((row & k_eff) != 0)
            up = pltpu.roll(mat, n2 - j, axis=0)   # up[i] = mat[(i + j) % n2]
            dn = pltpu.roll(mat, j, axis=0)        # dn[i] = mat[(i - j) % n2]
            partner = jnp.where(bit_j, dn, up)     # partner[i] = mat[i ^ j]
            mat = jnp.where(keep_min,
                            jnp.minimum(mat, partner),
                            jnp.maximum(mat, partner))
            j //= 2
        k *= 2
    return mat


def _ebsw_kernel(xy_ref, theta_ref, wd_ref, acc_ref, *, p, batch):
    k = pl.program_id(1)

    @pl.when(k == 0)
    def _init():
        acc_ref[...] = jnp.zeros_like(acc_ref)

    # Fused projection of x and y: (2B, tD) @ (tD, tL), f32 accumulation on MXU.
    acc_ref[...] += jnp.dot(xy_ref[...], theta_ref[...],
                            preferred_element_type=jnp.float32)

    @pl.when(k == pl.num_programs(1) - 1)
    def _epilogue():
        s = _paired_bitonic_sort(acc_ref[...], batch)     # both halves sorted asc
        diff = jnp.abs(s[:batch, :] - s[batch:, :])       # (B, l_tile)
        pw = diff * diff if p == 2 else diff ** p
        wd_ref[...] = jnp.sum(pw, axis=0, keepdims=True)  # lane-dense (1, l_tile)


class EBSW:
    """JAX/Pallas port of the PyTorch EBSW loss (encoder=None)."""

    def __init__(self, n_sampling, p=2, key=None, use_bf16=True,
                 d_tile=None, l_tile=None):
        self.p = p
        self.n_sampling = n_sampling
        # bf16 projection operands (x, y, theta) with f32 accumulation; set
        # use_bf16=False to validate against a pure-f32 PyTorch EBSW.
        self.use_bf16 = use_bf16
        self.key = jax.random.PRNGKey(42) if key is None else key
        # Optional upper caps on the auto-sized tiles (testing / tuning only).
        self._d_tile_cap = d_tile
        self._l_tile_cap = l_tile
        self._theta_cache = {}

    # ---------------------------------------------------------------- tiling
    def _vmem_budget(self):
        try:
            cap = int(pltpu.get_tpu_info().vmem_capacity_bytes)
        except Exception:
            cap = 128 << 20
        # ~90 MiB on v5e/v6e (128 MiB physical), ~45 MiB on v7x (64 MiB).
        return max(16 << 20, int(cap * 0.70))

    def _choose_tiles(self, b, d, l_pad, itemsize):
        budget = self._vmem_budget()

        # L tile: lane axis; >1 tile enables megacore / dual-TC splitting and
        # bounds the theta block when n_sampling is large.
        l_tile = min(l_pad, self._l_tile_cap if self._l_tile_cap else 1024)
        l_tile = max(128, (l_tile // 128) * 128)
        while l_pad % l_tile:
            l_tile -= 128

        d_rounded = _round_up(d, 128)
        fixed = 2 * b * l_tile * 4          # f32 accumulator scratch
        fixed += 2 * l_tile * 4             # double-buffered (1, l_tile) output
        fixed += 2 << 20                    # compiler / misc slack
        per_d = 2 * (2 * b + l_tile) * itemsize   # double-buffered xy + theta rows
        d_tile = (budget - fixed) // per_d
        d_tile = min(d_tile, (16 << 20) // (l_tile * itemsize))  # <=16 MiB theta DMA
        if self._d_tile_cap is not None:
            d_tile = min(d_tile, self._d_tile_cap)
        d_tile = max(128, (d_tile // 128) * 128)
        d_tile = min(d_tile, d_rounded)
        d_pad = _round_up(d, d_tile)
        # TODO(synk): if VMEM forces a tiny d_tile with many D steps (huge
        # n_sampling on v7x), deepen the theta pipeline (pl.Buffered(3)) instead
        # of shrinking further.
        return d_tile, d_pad, l_tile, budget

    # ---------------------------------------------------------------- theta
    def _theta(self, d, d_pad, l_pad, cdt):
        ck = (d, d_pad, l_pad, jnp.dtype(cdt).name)
        th = self._theta_cache.get(ck)
        if th is None:
            g = jax.random.normal(self.key, (d, self.n_sampling), dtype=jnp.float32)
            g = g / jnp.sqrt(jnp.sum(g * g, axis=0, keepdims=True))  # unit columns
            th = jnp.pad(g, ((0, d_pad - d),
                             (0, l_pad - self.n_sampling))).astype(cdt)
            self._theta_cache[ck] = th
        return th

    # ---------------------------------------------------------------- forward
    def __call__(self, first_sample, second_sample):
        b = first_sample.shape[0]
        # TODO(synk): support non-power-of-two batches (needs matched sentinel
        # rows in BOTH halves); the bitonic network requires 2^k rows per half.
        assert b >= 1 and (b & (b - 1)) == 0

        x = first_sample.reshape(b, -1).astype(jnp.float32)
        y = second_sample.reshape(b, -1).astype(jnp.float32)
        d = x.shape[1]
        l = self.n_sampling
        l_pad = _round_up(l, 128)

        cdt = jnp.bfloat16 if self.use_bf16 else jnp.float32
        itemsize = jnp.dtype(cdt).itemsize
        d_tile, d_pad, l_tile, budget = self._choose_tiles(b, d, l_pad, itemsize)

        theta_t = self._theta(d, d_pad, l_pad, cdt)           # (d_pad, l_pad), cached
        xy = jnp.concatenate([x, y], axis=0).astype(cdt)      # (2B, D): one matmul
        if d_pad != d:
            xy = jnp.pad(xy, ((0, 0), (0, d_pad - d)))

        nl = l_pad // l_tile
        nk = d_pad // d_tile
        kernel = partial(_ebsw_kernel, p=self.p, batch=b)

        wd = pl.pallas_call(
            kernel,
            out_shape=jax.ShapeDtypeStruct((1, l_pad), jnp.float32),
            grid_spec=pltpu.PrefetchScalarGridSpec(
                num_scalar_prefetch=0,
                grid=(nl, nk),
                in_specs=[
                    pl.BlockSpec((2 * b, d_tile), lambda li, ki: (0, ki)),   # x|y
                    pl.BlockSpec((d_tile, l_tile), lambda li, ki: (ki, li)), # theta
                ],
                out_specs=pl.BlockSpec((1, l_tile), lambda li, ki: (0, li)),
                scratch_shapes=[pltpu.VMEM((2 * b, l_tile), jnp.float32)],
            ),
            compiler_params=pltpu.CompilerParams(
                dimension_semantics=("parallel", "arbitrary"),
                vmem_limit_bytes=int(budget),
            ),
            cost_estimate=pl.CostEstimate(
                flops=2 * (2 * b) * d_pad * l_pad,
                transcendentals=0,
                bytes_accessed=(2 * b * d_pad * nl + d_pad * l_pad) * itemsize
                               + l_pad * 4,
            ),
        )(xy, theta_t)

        # Tiny finishing step on the (n_sampling,) vector in plain f32 XLA:
        # exact reciprocal in the softmax, well-defined for sw == 0.
        wdv = wd[0, :l]
        w = jax.nn.softmax(wdv)
        sw = jnp.sum(w * wdv)
        return jnp.sqrt(sw) if self.p == 2 else jnp.power(sw, 1.0 / self.p)

    # pure-JAX reference (same bf16 matmul operands as the kernel)
    def reference(self, first_sample, second_sample):
        b = first_sample.shape[0]
        x = first_sample.reshape(b, -1).astype(jnp.float32)
        y = second_sample.reshape(b, -1).astype(jnp.float32)
        g = jax.random.normal(self.key, (x.shape[1], self.n_sampling),
                              dtype=jnp.float32)
        theta_t = g / jnp.sqrt(jnp.sum(g * g, axis=0, keepdims=True))
        cdt = jnp.bfloat16 if self.use_bf16 else jnp.float32
        xp = jnp.dot(x.astype(cdt), theta_t.astype(cdt),
                     preferred_element_type=jnp.float32)
        yp = jnp.dot(y.astype(cdt), theta_t.astype(cdt),
                     preferred_element_type=jnp.float32)
        wd = jnp.sum(jnp.abs(jnp.sort(xp, axis=0) - jnp.sort(yp, axis=0)) ** self.p,
                     axis=0)
        w = jax.nn.softmax(wd)
        sw = jnp.sum(w * wd)
        return sw ** (1.0 / self.p)


if __name__ == "__main__":
    # batch=8 (power of two for the sort network), C=4, H=W=16 -> D=1024
    B, C, H, W = 8, 4, 16, 16
    n_sampling = 256

    key = jax.random.PRNGKey(0)
    k1, k2 = jax.random.split(key)
    first_sample = jax.random.uniform(k1, (B, C, H, W), dtype=jnp.float32)
    second_sample = jax.random.uniform(k2, (B, C, H, W), dtype=jnp.float32)

    # 1) Default path: VMEM-budget-derived tiles (single grid step at this size).
    loss_auto = EBSW(n_sampling=n_sampling, p=2)
    out_auto = jax.block_until_ready(loss_auto(first_sample, second_sample))
    ref = jax.block_until_ready(loss_auto.reference(first_sample, second_sample))
    if not jnp.allclose(out_auto, ref, rtol=2e-3, atol=1e-5):
        raise AssertionError(f"auto-tile mismatch: pallas={out_auto} ref={ref}")

    # 2) Forced small tiles: exercises the streamed D reduction (2 steps) and
    #    the L-parallel grid axis (2 tiles) -> a 2x2 grid with the same result.
    loss_tiled = EBSW(n_sampling=n_sampling, p=2, d_tile=512, l_tile=128)
    out_tiled = jax.block_until_ready(loss_tiled(first_sample, second_sample))
    if not jnp.allclose(out_tiled, ref, rtol=2e-3, atol=1e-5):
        raise AssertionError(f"tiled mismatch: pallas={out_tiled} ref={ref}")

    print("KERNEL_OK")
</pallas_src>

<mosaic_0001>
module attributes {stable_mosaic.version = 11 : i64} {
  func.func @_ebsw_kernel(%arg0: i32, %arg1: i32, %arg2: memref<16x1024xbf16, #tpu.memory_space<vmem>>, %arg3: memref<1024x256xbf16, #tpu.memory_space<vmem>>, %arg4: memref<1x256xf32, #tpu.memory_space<vmem>>, %arg5: memref<16x256xf32, #tpu.memory_space<vmem>>) attributes {dimension_semantics = [#tpu.dimension_semantics<parallel>, #tpu.dimension_semantics<arbitrary>], iteration_bounds = array<i64: 1, 1>, scalar_prefetch = 0 : i64, scratch_operands = 1 : i64, tpu.core_type = #tpu.core_type<tc>, window_params = [{transform_indices = @transform_0, window_bounds = array<i64: 16, 1024>}, {transform_indices = @transform_1, window_bounds = array<i64: 1024, 256>}, {transform_indices = @transform_2, window_bounds = array<i64: 1, 256>}]} {
    %c0_i32 = arith.constant 0 : i32
    %0 = arith.cmpi eq, %arg1, %c0_i32 : i32
    %1 = arith.extui %0 : i1 to i32
    %c0_i32_0 = arith.constant 0 : i32
    %2 = arith.cmpi ne, %1, %c0_i32_0 : i32
    scf.if %2 {
      %cst_10 = arith.constant 0.000000e+00 : f32
      %12 = vector.broadcast %cst_10 : f32 to vector<16x256xf32>
      %c0_11 = arith.constant 0 : index
      %c0_12 = arith.constant 0 : index
      %13 = vector.load %arg5[%c0_11, %c0_12] : memref<16x256xf32, #tpu.memory_space<vmem>>, vector<16x256xf32>
      tpu.vector_store %arg5[%c0_11, %c0_12], %12 {strides = array<i32>} : memref<16x256xf32, #tpu.memory_space<vmem>>, vector<16x256xf32>,
    } else {
    }
    %c0 = arith.constant 0 : index
    %c0_1 = arith.constant 0 : index
    %3 = vector.load %arg5[%c0, %c0_1] : memref<16x256xf32, #tpu.memory_space<vmem>>, vector<16x256xf32>
    %c0_2 = arith.constant 0 : index
    %c0_3 = arith.constant 0 : index
    %4 = vector.load %arg2[%c0_2, %c0_3] : memref<16x1024xbf16, #tpu.memory_space<vmem>>, vector<16x1024xbf16>
    %c0_4 = arith.constant 0 : index
    %c0_5 = arith.constant 0 : index
    %5 = vector.load %arg3[%c0_4, %c0_5] : memref<1024x256xbf16, #tpu.memory_space<vmem>>, vector<1024x256xbf16>
    %cst = arith.constant dense<0.000000e+00> : vector<16x256xf32>
    %6 = tpu.matmul %4, %5, %cst {dimension_numbers = #tpu.dot_dimension_numbers<[1], [0], [0], [1], [0, 0, 1, 1], [], []>} : vector<16x1024xbf16>, vector<1024x256xbf16>, vector<16x256xf32> -> vector<16x256xf32>
    %7 = arith.addf %3, %6 : vector<16x256xf32>
    %c0_6 = arith.constant 0 : index
    %c0_7 = arith.constant 0 : index
    %8 = vector.load %arg5[%c0_6, %c0_7] : memref<16x256xf32, #tpu.memory_space<vmem>>, vector<16x256xf32>
    tpu.vector_store %arg5[%c0_6, %c0_7], %7 {strides = array<i32>} : memref<16x256xf32, #tpu.memory_space<vmem>>, vector<16x256xf32>,
    %c0_i32_8 = arith.constant 0 : i32
    %9 = arith.cmpi eq, %arg1, %c0_i32_8 : i32
    %10 = arith.extui %9 : i1 to i32
    %c0_i32_9 = arith.constant 0 : i32
    %11 = arith.cmpi ne, %10, %c0_i32_9 : i32
    scf.if %11 {
      %c0_10 = arith.constant 0 : index
      %c0_11 = arith.constant 0 : index
      %12 = vector.load %arg5[%c0_10, %c0_11] : memref<16x256xf32, #tpu.memory_space<vmem>>, vector<16x256xf32>
      %13 = tpu.iota {dimensions = array<i32: 0>} : vector<16x1xi32>
      %c1_i32 = arith.constant 1 : i32
      %14 = vector.broadcast %c1_i32 : i32 to vector<16x1xi32>
      %15 = arith.andi %13, %14 : vector<16x1xi32>
      %c0_i32_12 = arith.constant 0 : i32
      %16 = vector.broadcast %c0_i32_12 : i32 to vector<16x1xi32>
      %17 = arith.cmpi ne, %15, %16 : vector<16x1xi32>
      %c2_i32 = arith.constant 2 : i32
      %18 = vector.broadcast %c2_i32 : i32 to vector<16x1xi32>
      %19 = arith.andi %13, %18 : vector<16x1xi32>
      %c0_i32_13 = arith.constant 0 : i32
      %20 = vector.broadcast %c0_i32_13 : i32 to vector<16x1xi32>
      %21 = arith.cmpi ne, %19, %20 : vector<16x1xi32>
      %22 = arith.xori %17, %21 : vector<16x1xi1>
      %cst_14 = arith.constant dense<true> : vector<16x1xi1>
      %23 = arith.xori %22, %cst_14 : vector<16x1xi1>
      %c15_i32 = arith.constant 15 : i32
      %24 = tpu.dynamic_rotate %12 by %c15_i32 dim 0 : vector<16x256xf32>, i32 -> vector<16x256xf32>
      %c1_i32_15 = arith.constant 1 : i32
      %25 = tpu.dynamic_rotate %12 by %c1_i32_15 dim 0 : vector<16x256xf32>, i32 -> vector<16x256xf32>
      %26 = vector.shape_cast %17 : vector<16x1xi1> to vector<16x1xi1>
      %27 = vector.broadcast %26 : vector<16x1xi1> to vector<16x256xi1>
      %28 = arith.select %27, %25, %24 : vector<16x256xi1>, vector<16x256xf32>
      %29 = arith.minimumf %12, %28 : vector<16x256xf32>
      %30 = arith.maximumf %12, %28 : vector<16x256xf32>
      %31 = vector.shape_cast %23 : vector<16x1xi1> to vector<16x1xi1>
      %32 = vector.broadcast %31 : vector<16x1xi1> to vector<16x256xi1>
      %33 = arith.select %32, %29, %30 : vector<16x256xi1>, vector<16x256xf32>
      %c2_i32_16 = arith.constant 2 : i32
      %34 = vector.broadcast %c2_i32_16 : i32 to vector<16x1xi32>
      %35 = arith.andi %13, %34 : vector<16x1xi32>
      %c0_i32_17 = arith.constant 0 : i32
      %36 = vector.broadcast %c0_i32_17 : i32 to vector<16x1xi32>
      %37 = arith.cmpi ne, %35, %36 : vector<16x1xi32>
      %c4_i32 = arith.constant 4 : i32
      %38 = vector.broadcast %c4_i32 : i32 to vector<16x1xi32>
      %39 = arith.andi %13, %38 : vector<16x1xi32>
      %c0_i32_18 = arith.constant 0 : i32
      %40 = vector.broadcast %c0_i32_18 : i32 to vector<16x1xi32>
      %41 = arith.cmpi ne, %39, %40 : vector<16x1xi32>
      %42 = arith.xori %37, %41 : vector<16x1xi1>
      %cst_19 = arith.constant dense<true> : vector<16x1xi1>
      %43 = arith.xori %42, %cst_19 : vector<16x1xi1>
      %c14_i32 = arith.constant 14 : i32
      %44 = tpu.dynamic_rotate %33 by %c14_i32 dim 0 : vector<16x256xf32>, i32 -> vector<16x256xf32>
      %c2_i32_20 = arith.constant 2 : i32
      %45 = tpu.dynamic_rotate %33 by %c2_i32_20 dim 0 : vector<16x256xf32>, i32 -> vector<16x256xf32>
      %46 = vector.shape_cast %37 : vector<16x1xi1> to vector<16x1xi1>
      %47 = vector.broadcast %46 : vector<16x1xi1> to vector<16x256xi1>
      %48 = arith.select %47, %45, %44 : vector<16x256xi1>, vector<16x256xf32>
      %49 = arith.minimumf %33, %48 : vector<16x256xf32>
      %50 = arith.maximumf %33, %48 : vector<16x256xf32>
      %51 = vector.shape_cast %43 : vector<16x1xi1> to vector<16x1xi1>
      %52 = vector.broadcast %51 : vector<16x1xi1> to vector<16x256xi1>
      %53 = arith.select %52, %49, %50 : vector<16x256xi1>, vector<16x256xf32>
      %c1_i32_21 = arith.constant 1 : i32
      %54 = vector.broadcast %c1_i32_21 : i32 to vector<16x1xi32>
      %55 = arith.andi %13, %54 : vector<16x1xi32>
      %c0_i32_22 = arith.constant 0 : i32
      %56 = vector.broadcast %c0_i32_22 : i32 to vector<16x1xi32>
      %57 = arith.cmpi ne, %55, %56 : vector<16x1xi32>
      %c4_i32_23 = arith.constant 4 : i32
      %58 = vector.broadcast %c4_i32_23 : i32 to vector<16x1xi32>
      %59 = arith.andi %13, %58 : vector<16x1xi32>
      %c0_i32_24 = arith.constant 0 : i32
      %60 = vector.broadcast %c0_i32_24 : i32 to vector<16x1xi32>
      %61 = arith.cmpi ne, %59, %60 : vector<16x1xi32>
      %62 = arith.xori %57, %61 : vector<16x1xi1>
      %cst_25 = arith.constant dense<true> : vector<16x1xi1>
      %63 = arith.xori %62, %cst_25 : vector<16x1xi1>
      %c15_i32_26 = arith.constant 15 : i32
      %64 = tpu.dynamic_rotate %53 by %c15_i32_26 dim 0 : vector<16x256xf32>, i32 -> vector<16x256xf32>
      %c1_i32_27 = arith.constant 1 : i32
      %65 = tpu.dynamic_rotate %53 by %c1_i32_27 dim 0 : vector<16x256xf32>, i32 -> vector<16x256xf32>
      %66 = vector.shape_cast %57 : vector<16x1xi1> to vector<16x1xi1>
      %67 = vector.broadcast %66 : vector<16x1xi1> to vector<16x256xi1>
      %68 = arith.select %67, %65, %64 : vector<16x256xi1>, vector<16x256xf32>
      %69 = arith.minimumf %53, %68 : vector<16x256xf32>
      %70 = arith.maximumf %53, %68 : vector<16x256xf32>
      %71 = vector.shape_cast %63 : vector<16x1xi1> to vector<16x1xi1>
      %72 = vector.broadcast %71 : vector<16x1xi1> to vector<16x256xi1>
      %73 = arith.select %72, %69, %70 : vector<16x256xi1>, vector<16x256xf32>
      %c4_i32_28 = arith.constant 4 : i32
      %74 = vector.broadcast %c4_i32_28 : i32 to vector<16x1xi32>
      %75 = arith.andi %13, %74 : vector<16x1xi32>
      %c0_i32_29 = arith.constant 0 : i32
      %76 = vector.broadcast %c0_i32_29 : i32 to vector<16x1xi32>
      %77 = arith.cmpi ne, %75, %76 : vector<16x1xi32>
      %c0_i32_30 = arith.constant 0 : i32
      %78 = vector.broadcast %c0_i32_30 : i32 to vector<16x1xi32>
      %79 = arith.andi %13, %78 : vector<16x1xi32>
      %c0_i32_31 = arith.constant 0 : i32
      %80 = vector.broadcast %c0_i32_31 : i32 to vector<16x1xi32>
      %81 = arith.cmpi ne, %79, %80 : vector<16x1xi32>
      %82 = arith.xori %77, %81 : vector<16x1xi1>
      %cst_32 = arith.constant dense<true> : vector<16x1xi1>
      %83 = arith.xori %82, %cst_32 : vector<16x1xi1>
      %c12_i32 = arith.constant 12 : i32
      %84 = tpu.dynamic_rotate %73 by %c12_i32 dim 0 : vector<16x256xf32>, i32 -> vector<16x256xf32>
      %c4_i32_33 = arith.constant 4 : i32
      %85 = tpu.dynamic_rotate %73 by %c4_i32_33 dim 0 : vector<16x256xf32>, i32 -> vector<16x256xf32>
      %86 = vector.shape_cast %77 : vector<16x1xi1> to vector<16x1xi1>
      %87 = vector.broadcast %86 : vector<16x1xi1> to vector<16x256xi1>
      %88 = arith.select %87, %85, %84 : vector<16x256xi1>, vector<16x256xf32>
      %89 = arith.minimumf %73, %88 : vector<16x256xf32>
      %90 = arith.maximumf %73, %88 : vector<16x256xf32>
      %91 = vector.shape_cast %83 : vector<16x1xi1> to vector<16x1xi1>
      %92 = vector.broadcast %91 : vector<16x1xi1> to vector<16x256xi1>
      %93 = arith.select %92, %89, %90 : vector<16x256xi1>, vector<16x256xf32>
      %c2_i32_34 = arith.constant 2 : i32
      %94 = vector.broadcast %c2_i32_34 : i32 to vector<16x1xi32>
      %95 = arith.andi %13, %94 : vector<16x1xi32>
      %c0_i32_35 = arith.constant 0 : i32
      %96 = vector.broadcast %c0_i32_35 : i32 to vector<16x1xi32>
      %97 = arith.cmpi ne, %95, %96 : vector<16x1xi32>
      %c0_i32_36 = arith.constant 0 : i32
      %98 = vector.broadcast %c0_i32_36 : i32 to vector<16x1xi32>
      %99 = arith.andi %13, %98 : vector<16x1xi32>
      %c0_i32_37 = arith.constant 0 : i32
      %100 = vector.broadcast %c0_i32_37 : i32 to vector<16x1xi32>
      %101 = arith.cmpi ne, %99, %100 : vector<16x1xi32>
      %102 = arith.xori %97, %101 : vector<16x1xi1>
      %cst_38 = arith.constant dense<true> : vector<16x1xi1>
      %103 = arith.xori %102, %cst_38 : vector<16x1xi1>
      %c14_i32_39 = arith.constant 14 : i32
      %104 = tpu.dynamic_rotate %93 by %c14_i32_39 dim 0 : vector<16x256xf32>, i32 -> vector<16x256xf32>
      %c2_i32_40 = arith.constant 2 : i32
      %105 = tpu.dynamic_rotate %93 by %c2_i32_40 dim 0 : vector<16x256xf32>, i32 -> vector<16x256xf32>
      %106 = vector.shape_cast %97 : vector<16x1xi1> to vector<16x1xi1>
      %107 = vector.broadcast %106 : vector<16x1xi1> to vector<16x256xi1>
      %108 = arith.select %107, %105, %104 : vector<16x256xi1>, vector<16x256xf32>
      %109 = arith.minimumf %93, %108 : vector<16x256xf32>
      %110 = arith.maximumf %93, %108 : vector<16x256xf32>
      %111 = vector.shape_cast %103 : vector<16x1xi1> to vector<16x1xi1>
      %112 = vector.broadcast %111 : vector<16x1xi1> to vector<16x256xi1>
      %113 = arith.select %112, %109, %110 : vector<16x256xi1>, vector<16x256xf32>
      %c1_i32_41 = arith.constant 1 : i32
      %114 = vector.broadcast %c1_i32_41 : i32 to vector<16x1xi32>
      %115 = arith.andi %13, %114 : vector<16x1xi32>
      %c0_i32_42 = arith.constant 0 : i32
      %116 = vector.broadcast %c0_i32_42 : i32 to vector<16x1xi32>
      %117 = arith.cmpi ne, %115, %116 : vector<16x1xi32>
      %c0_i32_43 = arith.constant 0 : i32
      %118 = vector.broadcast %c0_i32_43 : i32 to vector<16x1xi32>
      %119 = arith.andi %13, %118 : vector<16x1xi32>
      %c0_i32_44 = arith.constant 0 : i32
      %120 = vector.broadcast %c0_i32_44 : i32 to vector<16x1xi32>
      %121 = arith.cmpi ne, %119, %120 : vector<16x1xi32>
      %122 = arith.xori %117, %121 : vector<16x1xi1>
      %cst_45 = arith.constant dense<true> : vector<16x1xi1>
      %123 = arith.xori %122, %cst_45 : vector<16x1xi1>
      %c15_i32_46 = arith.constant 15 : i32
      %124 = tpu.dynamic_rotate %113 by %c15_i32_46 dim 0 : vector<16x256xf32>, i32 -> vector<16x256xf32>
      %c1_i32_47 = arith.constant 1 : i32
      %125 = tpu.dynamic_rotate %113 by %c1_i32_47 dim 0 : vector<16x256xf32>, i32 -> vector<16x256xf32>
      %126 = vector.shape_cast %117 : vector<16x1xi1> to vector<16x1xi1>
      %127 = vector.broadcast %126 : vector<16x1xi1> to vector<16x256xi1>
      %128 = arith.select %127, %125, %124 : vector<16x256xi1>, vector<16x256xf32>
      %129 = arith.minimumf %113, %128 : vector<16x256xf32>
      %130 = arith.maximumf %113, %128 : vector<16x256xf32>
      %131 = vector.shape_cast %123 : vector<16x1xi1> to vector<16x1xi1>
      %132 = vector.broadcast %131 : vector<16x1xi1> to vector<16x256xi1>
      %133 = arith.select %132, %129, %130 : vector<16x256xi1>, vector<16x256xf32>
      %134 = vector.extract_strided_slice %133 {offsets = [0, 0], sizes = [8, 256], strides = [1, 1]} : vector<16x256xf32> to vector<8x256xf32>
      %135 = vector.extract_strided_slice %133 {offsets = [8, 0], sizes = [8, 256], strides = [1, 1]} : vector<16x256xf32> to vector<8x256xf32>
      %136 = arith.subf %134, %135 : vector<8x256xf32>
      %137 = math.absf %136 : vector<8x256xf32>
      %138 = arith.mulf %137, %137 : vector<8x256xf32>
      %cst_48 = arith.constant dense<0.000000e+00> : vector<256xf32>
      %139 = vector.multi_reduction <add>, %138, %cst_48 [0] : vector<8x256xf32> to vector<256xf32>
      %140 = vector.shape_cast %139 : vector<256xf32> to vector<1x256xf32>
      %c0_49 = arith.constant 0 : index
      %c0_50 = arith.constant 0 : index
      %141 = vector.load %arg4[%c0_49, %c0_50] : memref<1x256xf32, #tpu.memory_space<vmem>>, vector<1x256xf32>
      tpu.vector_store %arg4[%c0_49, %c0_50], %140 {strides = array<i32>} : memref<1x256xf32, #tpu.memory_space<vmem>>, vector<1x256xf32>,
    } else {
    }
    return
  }
  func.func @transform_0(%arg0: i32, %arg1: i32) -> (i32, i32) {
    %c0_i32 = arith.constant 0 : i32
    %c0_i32_0 = arith.constant 0 : i32
    return %c0_i32, %arg1 : i32, i32
  }
  func.func @transform_1(%arg0: i32, %arg1: i32) -> (i32, i32) {
    %c0_i32 = arith.constant 0 : i32
    return %arg1, %arg0 : i32, i32
  }
  func.func @transform_2(%arg0: i32, %arg1: i32) -> (i32, i32) {
    %c0_i32 = arith.constant 0 : i32
    %c0_i32_0 = arith.constant 0 : i32
    return %c0_i32, %arg0 : i32, i32
  }
}

</mosaic_0001>

<bundles_post_ra>
// kernel: tpu_custom_call.1
= control target key start
LH: loop header
LB: loop body
LE: loop exit
PB: predicated region body
PF: predicated region fallthrough
CT: control target
= control target key end

     0   :  { %7 = vsyncpa [#allocation4], 0  ;;  %s2070_s0 = inlined_call_operand.hbm [shape: bf16[16,1024], index: 0, kind: input, shape index: {}]   ;;  %s2071_s1 = inlined_call_operand.hbm [shape: bf16[1024,256], index: 1, kind: input, shape index: {}]   ;;  %s2072_s2 = inlined_call_operand.hbm [shape: f32[1,256], index: 2, kind: output, shape index: {}]  }
   0x1   :  { %8 = vsyncpa [#allocation7], 0 }
   0x2   :  { %9 = vsyncpa [#allocation5], 0  ;;  %s1773_s9 = smov [#allocation3]  }
   0x3   :  { %s15_s10 = sshll.u32 %s1773_s9, 4  ;;  %s16_s10 = int_to_ptr.vmem [resolvable:$true] %s15_s10 }
   0x4   :  { %s1715_s11 = scalar_lea.vmem %s16_s10, 1024  ;;  %p1720_p1 = scmp.lt.s32.totalorder %s16_s10, %s16_s10 }
   0x5   :  { %p1716_p0 = scmp.ne.s32.totalorder %s16_s10, %s1715_s11  ;;  %p1721_p2 = scmp.lt.s32.totalorder %s1715_s11, %s1715_s11 }
   0x7   :  { %p1722_p3 = por %p1721_p2, %p1720_p1 }
   0x9   :  { %p1723_p4 = pnand %p1722_p3, %p1716_p0 }
   0xb   :  { %1726 = shalt.err (!%p1723_p4)
}
   0xc   :  { %s1774_s12 = smov 512   ;;  %s1775_s13 = smov 32  }
   0xd   :  { %21 = dma.hbm_to_vmem [thread:$0]  %s2070_s0, 1024, %s16_s10, [#allocation4], %s1774_s12, %s1774_s12, %s1775_s13  }
   0xe   :  { %s1776_s16 = smov [#allocation6]  }
   0xf   :  { %s27_s17 = sshll.u32 %s1776_s16, 4  ;;  %s28_s17 = int_to_ptr.vmem [resolvable:$true] %s27_s17 }
  0x10   :  { %s1735_s18 = scalar_lea.vmem %s28_s17, 16384  ;;  %p1740_p6 = scmp.lt.s32.totalorder %s28_s17, %s28_s17 }
  0x11   :  { %p1736_p5 = scmp.ne.s32.totalorder %s28_s17, %s1735_s18  ;;  %p1741_p7 = scmp.lt.s32.totalorder %s1735_s18, %s1735_s18 }
  0x13   :  { %p1742_p8 = por %p1741_p7, %p1740_p6 }
  0x15   :  { %p1743_p9 = pnand %p1742_p8, %p1736_p5 }
  0x17   :  { %1746 = shalt.err (!%p1743_p9)
}
  0x18   :  { %s1777_s19 = smov 128   ;;  %s1778_s20 = smov 8  }
  0x19   :  { %33 = dma.hbm_to_vmem [thread:$0]  %s2071_s1, 16384, %s28_s17, [#allocation7], %s1777_s19, %s1777_s19, %s1778_s20  }
  0x1a   :  { %1767 = dma.done.wait [#allocation4], 1024  }
  0x1b   :  { %1768 = vsyncadd [#allocation4], 4294966272 }
  0x1c   :  { %1769 = dma.done.wait [#allocation7], 16384  }
  0x1d   :  { %1770 = vsyncadd [#allocation7], 4294950912  ;;  %v1515_v0 = vld [vmem:[#allocation6 + $0x74] ss:$8 sps:$4 sm:$0xff]   ;;  %v1519_v2 = vld [vmem:[#allocation6 + $0x70] ss:$8 sps:$4 sm:$0xff]  }
  0x1e   :  { %v1517_v1 = vld [vmem:[#allocation6 + $0x174] ss:$8 sps:$4 sm:$0xff]   ;;  %868 = vmatprep.subr.bf16.mxu0 %v1515_v0  ;;  %v1520_v3 = vld [vmem:[#allocation6 + $0x170] ss:$8 sps:$4 sm:$0xff]   ;;  %v1521_v4 = vld [vmem:[#allocation6 + $0x64] ss:$8 sps:$4 sm:$0xff]  }
  0x1f   :  { %911 = vmatprep.subr.bf16.mxu1 %v1517_v1  ;;  %869 = vmatpush1.bf16.msra.mxu0 %v1519_v2  ;;  %v1523_v5 = vld [vmem:[#allocation6 + $0x164] ss:$8 sps:$4 sm:$0xff]   ;;  %v1525_v6 = vld [vmem:[#allocation6 + $0x60] ss:$8 sps:$4 sm:$0xff]   ;;  %v1527_v8 = vld [vmem:[#allocation6 + $0x54] ss:$8 sps:$4 sm:$0xff]  }
  0x20   :  { %912 = vmatpush1.bf16.msra.mxu1 %v1520_v3  ;;  %870 = vmatprep.subr.bf16.mxu0 %v1521_v4  ;;  %v1526_v7 = vld [vmem:[#allocation6 + $0x160] ss:$8 sps:$4 sm:$0xff]   ;;  %v1529_v9 = vld [vmem:[#allocation6 + $0x154] ss:$8 sps:$4 sm:$0xff]   ;;  %v1531_v10 = vld [vmem:[#allocation6 + $0x50] ss:$8 sps:$4 sm:$0xff]  }
  0x21   :  { %913 = vmatprep.subr.bf16.mxu1 %v1523_v5  ;;  %v1532_v11 = vld [vmem:[#allocation6 + $0x150] ss:$8 sps:$4 sm:$0xff]   ;;  %v1533_v12 = vld [vmem:[#allocation6 + $0x44] ss:$8 sps:$4 sm:$0xff]   ;;  %v1537_v14 = vld [vmem:[#allocation6 + $0x40] ss:$8 sps:$4 sm:$0xff]  }
  0x22   :  { %v1535_v13 = vld [vmem:[#allocation6 + $0x144] ss:$8 sps:$4 sm:$0xff]   ;;  %v1538_v15 = vld [vmem:[#allocation6 + $0x140] ss:$8 sps:$4 sm:$0xff]   ;;  %v1539_v16 = vld [vmem:[#allocation6 + $0x34] ss:$8 sps:$4 sm:$0xff]  }
  0x23   :  { %871 = vmatpush1.bf16.msra.mxu0 %v1525_v6  ;;  %v1541_v17 = vld [vmem:[#allocation6 + $0x134] ss:$8 sps:$4 sm:$0xff]   ;;  %v1543_v18 = vld [vmem:[#allocation6 + $0x30] ss:$8 sps:$4 sm:$0xff]   ;;  %v1545_v20 = vld [vmem:[#allocation6 + $0x24] ss:$8 sps:$4 sm:$0xff]  }
  0x24   :  { %914 = vmatpush1.bf16.msra.mxu1 %v1526_v7  ;;  %872 = vmatprep.subr.bf16.mxu0 %v1527_v8  ;;  %v1544_v19 = vld [vmem:[#allocation6 + $0x130] ss:$8 sps:$4 sm:$0xff]   ;;  %v1547_v21 = vld [vmem:[#allocation6 + $0x124] ss:$8 sps:$4 sm:$0xff]   ;;  %v1549_v22 = vld [vmem:[#allocation6 + $0x20] ss:$8 sps:$4 sm:$0xff]  }
  0x25   :  { %915 = vmatprep.subr.bf16.mxu1 %v1529_v9  ;;  %v1550_v23 = vld [vmem:[#allocation6 + $0x120] ss:$8 sps:$4 sm:$0xff]   ;;  %v1551_v24 = vld [vmem:[#allocation6 + $0x14] ss:$8 sps:$4 sm:$0xff]   ;;  %v1555_v26 = vld [vmem:[#allocation6 + $0x10] ss:$8 sps:$4 sm:$0xff]  }
  0x26   :  { %v1553_v25 = vld [vmem:[#allocation6 + $0x114] ss:$8 sps:$4 sm:$0xff]   ;;  %v1556_v27 = vld [vmem:[#allocation6 + $0x110] ss:$8 sps:$4 sm:$0xff]   ;;  %v1557_v28 = vld [vmem:[#allocation6 + $0x4] ss:$8 sps:$4 sm:$0xff]  }
  0x27   :  { %873 = vmatpush1.bf16.msra.mxu0 %v1531_v10  ;;  %v1559_v29 = vld [vmem:[#allocation6 + $0x104] ss:$8 sps:$4 sm:$0xff]   ;;  %v1561_v30 = vld [vmem:[#allocation6] ss:$8 sps:$4 sm:$0xff]   ;;  %v1563_v32 = vld [vmem:[#allocation6 + $0xf4] ss:$8 sps:$4 sm:$0xff]  }
  0x28   :  { %916 = vmatpush1.bf16.msra.mxu1 %v1532_v11  ;;  %874 = vmatprep.subr.bf16.mxu0 %v1533_v12  ;;  %v1562_v31 = vld [vmem:[#allocation6 + $0x100] ss:$8 sps:$4 sm:$0xff]   ;;  %v1565_v33 = vld [vmem:[#allocation6 + $0x1f4] ss:$8 sps:$4 sm:$0xff]   ;;  %v1567_v34 = vld [vmem:[#allocation6 + $0xf0] ss:$8 sps:$4 sm:$0xff]  }
  0x29   :  { %917 = vmatprep.subr.bf16.mxu1 %v1535_v13  ;;  %v1568_v35 = vld [vmem:[#allocation6 + $0x1f0] ss:$8 sps:$4 sm:$0xff]   ;;  %v1569_v36 = vld [vmem:[#allocation6 + $0xe4] ss:$8 sps:$4 sm:$0xff]   ;;  %v1573_v38 = vld [vmem:[#allocation6 + $0xe0] ss:$8 sps:$4 sm:$0xff]  }
  0x2a   :  { %v1571_v37 = vld [vmem:[#allocation6 + $0x1e4] ss:$8 sps:$4 sm:$0xff]   ;;  %v1574_v39 = vld [vmem:[#allocation6 + $0x1e0] ss:$8 sps:$4 sm:$0xff]   ;;  %v1575_v40 = vld [vmem:[#allocation6 + $0xd4] ss:$8 sps:$4 sm:$0xff]  }
  0x2b   :  { %875 = vmatpush1.bf16.msra.mxu0 %v1537_v14  ;;  %v1577_v41 = vld [vmem:[#allocation6 + $0x1d4] ss:$8 sps:$4 sm:$0xff]   ;;  %v1579_v42 = vld [vmem:[#allocation6 + $0xd0] ss:$8 sps:$4 sm:$0xff]   ;;  %v1581_v44 = vld [vmem:[#allocation6 + $0xc4] ss:$8 sps:$4 sm:$0xff]  }
  0x2c   :  { %918 = vmatpush1.bf16.msra.mxu1 %v1538_v15  ;;  %876 = vmatprep.subr.bf16.mxu0 %v1539_v16  ;;  %v1580_v43 = vld [vmem:[#allocation6 + $0x1d0] ss:$8 sps:$4 sm:$0xff]   ;;  %v1583_v45 = vld [vmem:[#allocation6 + $0x1c4] ss:$8 sps:$4 sm:$0xff]   ;;  %v1585_v46 = vld [vmem:[#allocation6 + $0xc0] ss:$8 sps:$4 sm:$0xff]  }
  0x2d   :  { %919 = vmatprep.subr.bf16.mxu1 %v1541_v17  ;;  %v1586_v47 = vld [vmem:[#allocation6 + $0x1c0] ss:$8 sps:$4 sm:$0xff]   ;;  %v1587_v52 = vld [vmem:[#allocation6 + $0xb4] ss:$8 sps:$4 sm:$0xff]   ;;  %v1591_v56 = vld [vmem:[#allocation6 + $0xb0] ss:$8 sps:$4 sm:$0xff]  }
  0x2e   :  { %v52_v48 = vld [vmem:[#allocation3] sm:$0xff]  ;;  %v53_v50 = vld [vmem:[#allocation3 + $0x8] sm:$0xff]  ;;  %v1589_v54 = vld [vmem:[#allocation6 + $0x1b4] ss:$8 sps:$4 sm:$0xff]   ;;  %vm1779_vm8 = vmmov 1   ;;  %s1781_s0 = smov [#allocation8]  }
  0x2f   :  { %877 = vmatpush1.bf16.msra.mxu0 %v1543_v18  ;;  %v56_v49 = vld [vmem:[#allocation3 + $0x20] sm:$0xff]  ;;  %v57_v51 = vld [vmem:[#allocation3 + $0x28] sm:$0xff]  ;;  %v1592_v57 = vld [vmem:[#allocation6 + $0x1b0] ss:$8 sps:$4 sm:$0xff]   ;;  %s1360_s1 = sshll.u32 %s1781_s0, 4  ;;  %s1361_s1 = int_to_ptr.vmem [resolvable:$true] %s1360_s1 }
  0x30   :  { %920 = vmatpush1.bf16.msra.mxu1 %v1544_v19  ;;  %878 = vmatprep.subr.bf16.mxu0 %v1545_v20  ;;  %v1371_v53 = vcombine.high %v52_v48, %v56_v49  ;;  %v1373_v55 = vcombine.high %v53_v50, %v57_v51  ;;  %v1593_v58 = vld [vmem:[#allocation6 + $0xa4] ss:$8 sps:$4 sm:$0xff]   ;;  %v1597_v60 = vld [vmem:[#allocation6 + $0xa0] ss:$8 sps:$4 sm:$0xff]   ;;  %v1599_v62 = vld [vmem:[#allocation6 + $0x94] ss:$8 sps:$4 sm:$0xff]   ;;  %v1370_v8 = vcombine.low %v52_v48, %v56_v49  ;;  %p1752_p11 = scmp.lt.s32.totalorder %s1361_s1, %s1361_s1 }
  0x31   :  { %921 = vmatprep.subr.bf16.mxu1 %v1547_v21  ;;  %v1595_v59 = vld [vmem:[#allocation6 + $0x1a4] ss:$8 sps:$4 sm:$0xff]   ;;  %v1598_v61 = vld [vmem:[#allocation6 + $0x1a0] ss:$8 sps:$4 sm:$0xff]   ;;  %v1601_v63 = vld [vmem:[#allocation6 + $0x194] ss:$8 sps:$4 sm:$0xff]   ;;  %v1372_v9 = vcombine.low %v53_v50, %v57_v51 }
  0x32   :  { %900 = vmatprep.mubr.bf16.mxu0 %v1371_v53  ;;  %943 = vmatprep.mubr.bf16.mxu1 %v1373_v55  ;;  %v1603_v0 = vld [vmem:[#allocation6 + $0x90] ss:$8 sps:$4 sm:$0xff]   ;;  %v1605_v2 = vld [vmem:[#allocation6 + $0x84] ss:$8 sps:$4 sm:$0xff]   ;;  %v1609_v4 = vld [vmem:[#allocation6 + $0x80] ss:$8 sps:$4 sm:$0xff]  }
  0x33   :  { %879 = vmatpush1.bf16.msra.mxu0 %v1549_v22  ;;  %v1604_v1 = vld [vmem:[#allocation6 + $0x190] ss:$8 sps:$4 sm:$0xff]   ;;  %v1607_v3 = vld [vmem:[#allocation6 + $0x184] ss:$8 sps:$4 sm:$0xff]   ;;  %v1610_v5 = vld [vmem:[#allocation6 + $0x180] ss:$8 sps:$4 sm:$0xff]  }
  0x34   :  { %922 = vmatpush1.bf16.msra.mxu1 %v1550_v23  ;;  %880 = vmatprep.subr.bf16.mxu0 %v1551_v24  ;;  %v1613_v6 = vld [vmem:[#allocation6 + $0x274] ss:$8 sps:$4 sm:$0xff]   ;;  %v1611_v10 = vld [vmem:[#allocation6 + $0x270] ss:$8 sps:$4 sm:$0xff]   ;;  %v1619_v12 = vld [vmem:[#allocation6 + $0x264] ss:$8 sps:$4 sm:$0xff]  }
  0x35   :  { %923 = vmatprep.subr.bf16.mxu1 %v1553_v25  ;;  %v1616_v7 = vld [vmem:[#allocation6 + $0x374] ss:$8 sps:$4 sm:$0xff]   ;;  %v1614_v11 = vld [vmem:[#allocation6 + $0x370] ss:$8 sps:$4 sm:$0xff]   ;;  %v1622_v13 = vld [vmem:[#allocation6 + $0x364] ss:$8 sps:$4 sm:$0xff]  }
  0x36   :  { %v1617_v14 = vld [vmem:[#allocation6 + $0x260] ss:$8 sps:$4 sm:$0xff]   ;;  %v1625_v16 = vld [vmem:[#allocation6 + $0x254] ss:$8 sps:$4 sm:$0xff]   ;;  %v1623_v18 = vld [vmem:[#allocation6 + $0x250] ss:$8 sps:$4 sm:$0xff]  }
  0x37   :  { %881 = vmatpush1.bf16.msra.mxu0 %v1555_v26  ;;  %v1620_v15 = vld [vmem:[#allocation6 + $0x360] ss:$8 sps:$4 sm:$0xff]   ;;  %v1628_v17 = vld [vmem:[#allocation6 + $0x354] ss:$8 sps:$4 sm:$0xff]   ;;  %v1626_v19 = vld [vmem:[#allocation6 + $0x350] ss:$8 sps:$4 sm:$0xff]  }
  0x38   :  { %924 = vmatpush1.bf16.msra.mxu1 %v1556_v27  ;;  %882 = vmatprep.subr.bf16.mxu0 %v1557_v28  ;;  %v1631_v20 = vld [vmem:[#allocation6 + $0x244] ss:$8 sps:$4 sm:$0xff]   ;;  %v1629_v22 = vld [vmem:[#allocation6 + $0x240] ss:$8 sps:$4 sm:$0xff]   ;;  %v1637_v24 = vld [vmem:[#allocation6 + $0x234] ss:$8 sps:$4 sm:$0xff]  }
  0x39   :  { %925 = vmatprep.subr.bf16.mxu1 %v1559_v29  ;;  %v1634_v21 = vld [vmem:[#allocation6 + $0x344] ss:$8 sps:$4 sm:$0xff]   ;;  %v1632_v23 = vld [vmem:[#allocation6 + $0x340] ss:$8 sps:$4 sm:$0xff]   ;;  %v1640_v25 = vld [vmem:[#allocation6 + $0x334] ss:$8 sps:$4 sm:$0xff]  }
  0x3a   :  { %v1635_v26 = vld [vmem:[#allocation6 + $0x230] ss:$8 sps:$4 sm:$0xff]   ;;  %v1643_v28 = vld [vmem:[#allocation6 + $0x224] ss:$8 sps:$4 sm:$0xff]   ;;  %v1668_v53 = vld [vmem:[#allocation6 + $0x3e0] ss:$8 sps:$4 sm:$0xff]  }
  0x3b   :  { %883 = vmatpush1.bf16.msra.mxu0 %v1561_v30  ;;  %v1638_v27 = vld [vmem:[#allocation6 + $0x330] ss:$8 sps:$4 sm:$0xff]   ;;  %v1646_v29 = vld [vmem:[#allocation6 + $0x324] ss:$8 sps:$4 sm:$0xff]   ;;  %v1641_v30 = vld [vmem:[#allocation6 + $0x220] ss:$8 sps:$4 sm:$0xff]  }
  0x3c   :  { %926 = vmatpush1.bf16.msra.mxu1 %v1562_v31  ;;  %884 = vmatprep.subr.bf16.mxu0 %v1563_v32  ;;  %v1644_v31 = vld [vmem:[#allocation6 + $0x320] ss:$8 sps:$4 sm:$0xff]   ;;  %v1649_v32 = vld [vmem:[#allocation6 + $0x214] ss:$8 sps:$4 sm:$0xff]   ;;  %v1659_v48 = vld [vmem:[#allocation6 + $0x2f0] ss:$8 sps:$4 sm:$0xff]  }
  0x3d   :  { %927 = vmatprep.subr.bf16.mxu1 %v1565_v33  ;;  %v1652_v33 = vld [vmem:[#allocation6 + $0x314] ss:$8 sps:$4 sm:$0xff]   ;;  %v1662_v49 = vld [vmem:[#allocation6 + $0x3f0] ss:$8 sps:$4 sm:$0xff]   ;;  %v1667_v50 = vld [vmem:[#allocation6 + $0x2e4] ss:$8 sps:$4 sm:$0xff]  }
  0x3e   :  { %v1670_v51 = vld [vmem:[#allocation6 + $0x3e4] ss:$8 sps:$4 sm:$0xff]   ;;  %v1676_v55 = vld [vmem:[#allocation6 + $0x3d4] ss:$8 sps:$4 sm:$0xff]   ;;  %s1747_s23 = scalar_lea.vmem %s1361_s1, 32 }
  0x3f   :  { %885 = vmatpush2.bf16.msra.mxu0 %v1567_v34  ;;  %v1803_v34 = vld [vmem:[#allocation3 + $0x10] sm:$0xff]  ;;  %p1748_p10 = scmp.ne.s32.totalorder %s1361_s1, %s1747_s23  ;;  %p1753_p12 = scmp.lt.s32.totalorder %s1747_s23, %s1747_s23 }
  0x40   :  { %928 = vmatpush2.bf16.msra.mxu1 %v1568_v35  ;;  %886 = vmatprep.subr.bf16.mxu0 %v1569_v36  ;;  %v1805_v35 = vld [vmem:[#allocation3 + $0x30] sm:$0xff]  ;;  %v1807_v36 = vld [vmem:[#allocation3 + $0x18] sm:$0xff] }
  0x41   :  { %929 = vmatprep.subr.bf16.mxu1 %v1571_v37  ;;  %v1809_v37 = vld [vmem:[#allocation3 + $0x38] sm:$0xff]  ;;  %p1754_p13 = por %p1753_p12, %p1752_p11 }
  0x43   :  { %887 = vmatpush2.bf16.msra.mxu0 %v1573_v38  ;;  %v1647_v38 = vld [vmem:[#allocation6 + $0x210] ss:$8 sps:$4 sm:$0xff]   ;;  %p1755_p0 = pnand %p1754_p13, %p1748_p10 }
  0x44   :  { %930 = vmatpush2.bf16.msra.mxu1 %v1574_v39  ;;  %888 = vmatprep.subr.bf16.mxu0 %v1575_v40  ;;  %v1650_v39 = vld [vmem:[#allocation6 + $0x310] ss:$8 sps:$4 sm:$0xff]   ;;  %v1375_v40 = vcombine.high %v1803_v34, %v1805_v35 }
  0x45   :  { %931 = vmatprep.subr.bf16.mxu1 %v1577_v41  ;;  %v1655_v41 = vld [vmem:[#allocation6 + $0x204] ss:$8 sps:$4 sm:$0xff]  }
  0x47   :  { %889 = vmatpush2.bf16.msra.mxu0 %v1579_v42  ;;  %v1658_v42 = vld [vmem:[#allocation6 + $0x304] ss:$8 sps:$4 sm:$0xff]  }
  0x48   :  { %932 = vmatpush2.bf16.msra.mxu1 %v1580_v43  ;;  %890 = vmatprep.subr.bf16.mxu0 %v1581_v44  ;;  %v1377_v43 = vcombine.high %v1807_v36, %v1809_v37  ;;  %v1653_v44 = vld [vmem:[#allocation6 + $0x200] ss:$8 sps:$4 sm:$0xff]  }
  0x49   :  { %933 = vmatprep.subr.bf16.mxu1 %v1583_v45  ;;  %v1656_v45 = vld [vmem:[#allocation6 + $0x300] ss:$8 sps:$4 sm:$0xff]  }
  0x4b   :  { %891 = vmatpush2.bf16.msra.mxu0 %v1585_v46  ;;  %v1661_v46 = vld [vmem:[#allocation6 + $0x2f4] ss:$8 sps:$4 sm:$0xff]  }
  0x4c   :  { %934 = vmatpush2.bf16.msra.mxu1 %v1586_v47  ;;  %892 = vmatprep.subr.bf16.mxu0 %v1587_v52  ;;  %v1664_v47 = vld [vmem:[#allocation6 + $0x3f4] ss:$8 sps:$4 sm:$0xff]   ;;  %v1665_v52 = vld [vmem:[#allocation6 + $0x2e0] ss:$8 sps:$4 sm:$0xff]  }
  0x4d   :  { %935 = vmatprep.subr.bf16.mxu1 %v1589_v54  ;;  %v1673_v54 = vld [vmem:[#allocation6 + $0x2d4] ss:$8 sps:$4 sm:$0xff]  }
  0x4f   :  { %893 = vmatpush2.bf16.msra.mxu0 %v1591_v56  ;;  %v1671_v56 = vld [vmem:[#allocation6 + $0x2d0] ss:$8 sps:$4 sm:$0xff]  }
  0x50   :  { %936 = vmatpush2.bf16.msra.mxu1 %v1592_v57  ;;  %894 = vmatprep.subr.bf16.mxu0 %v1593_v58  ;;  %v1674_v57 = vld [vmem:[#allocation6 + $0x3d0] ss:$8 sps:$4 sm:$0xff]   ;;  %v1679_v58 = vld [vmem:[#allocation6 + $0x2c4] ss:$8 sps:$4 sm:$0xff]  }
  0x51   :  { %937 = vmatprep.subr.bf16.mxu1 %v1595_v59  ;;  %v1682_v59 = vld [vmem:[#allocation6 + $0x3c4] ss:$8 sps:$4 sm:$0xff]  }
  0x53   :  { %895 = vmatpush2.bf16.msra.mxu0 %v1597_v60  ;;  %v1677_v60 = vld [vmem:[#allocation6 + $0x2c0] ss:$8 sps:$4 sm:$0xff]  }
  0x54   :  { %938 = vmatpush2.bf16.msra.mxu1 %v1598_v61  ;;  %896 = vmatprep.subr.bf16.mxu0 %v1599_v62  ;;  %v1680_v61 = vld [vmem:[#allocation6 + $0x3c0] ss:$8 sps:$4 sm:$0xff]   ;;  %v1685_v62 = vld [vmem:[#allocation6 + $0x2b4] ss:$8 sps:$4 sm:$0xff]  }
  0x55   :  { %939 = vmatprep.subr.bf16.mxu1 %v1601_v63  ;;  %v1688_v63 = vld [vmem:[#allocation6 + $0x3b4] ss:$8 sps:$4 sm:$0xff]  }
  0x57   :  { %897 = vmatpush2.bf16.msra.mxu0 %v1603_v0  ;;  %v1683_v0 = vld [vmem:[#allocation6 + $0x2b0] ss:$8 sps:$4 sm:$0xff]  }
  0x58   :  { %940 = vmatpush2.bf16.msra.mxu1 %v1604_v1  ;;  %898 = vmatprep.subr.bf16.mxu0 %v1605_v2  ;;  %v1686_v1 = vld [vmem:[#allocation6 + $0x3b0] ss:$8 sps:$4 sm:$0xff]   ;;  %v1691_v2 = vld [vmem:[#allocation6 + $0x2a4] ss:$8 sps:$4 sm:$0xff]  }
  0x59   :  { %941 = vmatprep.subr.bf16.mxu1 %v1607_v3  ;;  %v1694_v3 = vld [vmem:[#allocation6 + $0x3a4] ss:$8 sps:$4 sm:$0xff]  }
  0x5b   :  { %899 = vmatpush2.bf16.msra.mxu0 %v1609_v4  ;;  %v1689_v4 = vld [vmem:[#allocation6 + $0x2a0] ss:$8 sps:$4 sm:$0xff]  }
  0x5c   :  { %942 = vmatpush2.bf16.msra.mxu1 %v1610_v5  ;;  %954 = vmatprep.subr.bf16.mxu0 %v1613_v6  ;;  %v1692_v5 = vld [vmem:[#allocation6 + $0x3a0] ss:$8 sps:$4 sm:$0xff]   ;;  %v1697_v6 = vld [vmem:[#allocation6 + $0x294] ss:$8 sps:$4 sm:$0xff]  }
  0x5d   :  { %997 = vmatprep.subr.bf16.mxu1 %v1616_v7  ;;  %v1700_v7 = vld [vmem:[#allocation6 + $0x394] ss:$8 sps:$4 sm:$0xff]  }
  0x5e   :  { %901 = vmatmul.mubr.bf16.vlgmr.msra.gmra.mxu0 %v1370_v8  ;;  %v1695_v8 = vld [vmem:[#allocation6 + $0x290] ss:$8 sps:$4 sm:$0xff]  }
  0x5f   :  { %944 = vmatmul.mubr.bf16.vlgmr.msra.gmra.mxu1 %v1372_v9  ;;  %955 = vmatpush1.bf16.msra.mxu0 %v1611_v10  ;;  %v1698_v9 = vld [vmem:[#allocation6 + $0x390] ss:$8 sps:$4 sm:$0xff]   ;;  %v1703_v10 = vld [vmem:[#allocation6 + $0x284] ss:$8 sps:$4 sm:$0xff]  }
  0x60   :  { %998 = vmatpush1.bf16.msra.mxu1 %v1614_v11  ;;  %956 = vmatprep.subr.bf16.mxu0 %v1619_v12  ;;  %v1706_v11 = vld [vmem:[#allocation6 + $0x384] ss:$8 sps:$4 sm:$0xff]   ;;  %v1701_v12 = vld [vmem:[#allocation6 + $0x280] ss:$8 sps:$4 sm:$0xff]  }
  0x61   :  { %999 = vmatprep.subr.bf16.mxu1 %v1622_v13  ;;  %986 = vmatprep.mubr.bf16.mxu0 %v1375_v40  ;;  %v1704_v13 = vld [vmem:[#allocation6 + $0x380] ss:$8 sps:$4 sm:$0xff]  }
  0x62   :  { %1029 = vmatprep.mubr.bf16.mxu1 %v1377_v43 }
  0x63   :  { %957 = vmatpush1.bf16.msra.mxu0 %v1617_v14  ;;  %v1374_v14 = vcombine.low %v1803_v34, %v1805_v35 }
  0x64   :  { %1000 = vmatpush1.bf16.msra.mxu1 %v1620_v15  ;;  %958 = vmatprep.subr.bf16.mxu0 %v1625_v16  ;;  %v1376_v15 = vcombine.low %v1807_v36, %v1809_v37 }
  0x65   :  { %1001 = vmatprep.subr.bf16.mxu1 %v1628_v17 }
  0x67   :  { %959 = vmatpush1.bf16.msra.mxu0 %v1623_v18 }
  0x68   :  { %1002 = vmatpush1.bf16.msra.mxu1 %v1626_v19  ;;  %960 = vmatprep.subr.bf16.mxu0 %v1631_v20  ;;  %v1055_v20 = vlaneseq }
  0x69   :  { %1003 = vmatprep.subr.bf16.mxu1 %v1634_v21 }
  0x6b   :  { %961 = vmatpush1.bf16.msra.mxu0 %v1629_v22 }
  0x6c   :  { %1004 = vmatpush1.bf16.msra.mxu1 %v1632_v23  ;;  %962 = vmatprep.subr.bf16.mxu0 %v1637_v24  ;;  %v1820_v23 = vshrl.u32 %v1055_v20, 7 }
  0x6d   :  { %1005 = vmatprep.subr.bf16.mxu1 %v1640_v25 }
  0x6e   :  { %v1062_v40 = vand.u32 2, %v1820_v23  ;;  %vm1074_vm0 = vcmp.lt.s32.totalorder %v1820_v23, 7  ;;  %vm1083_vm1 = vcmp.lt.s32.totalorder %v1820_v23, 1  ;;  %vm1124_vm13 = vcmp.lt.s32.totalorder %v1820_v23, 6 }
  0x6f   :  { %963 = vmatpush1.bf16.msra.mxu0 %v1635_v26  ;;  %vm1133_vm14 = vcmp.lt.s32.totalorder %v1820_v23, 2 }
  0x70   :  { %1006 = vmatpush1.bf16.msra.mxu1 %v1638_v27  ;;  %964 = vmatprep.subr.bf16.mxu0 %v1643_v28  ;;  %vm1839_vm4 = vcmp.ne.s32.totalorder %v1062_v40, 0 }
  0x71   :  { %1007 = vmatprep.subr.bf16.mxu1 %v1646_v29  ;;  %v1823_v29 = vadd.s32 8, %v1820_v23 }
  0x73   :  { %965 = vmatpush1.bf16.msra.mxu0 %v1641_v30 }
  0x74   :  { %1008 = vmatpush1.bf16.msra.mxu1 %v1644_v31  ;;  %966 = vmatprep.subr.bf16.mxu0 %v1649_v32 }
  0x75   :  { %1009 = vmatprep.subr.bf16.mxu1 %v1652_v33 }
  0x77   :  { %967 = vmatpush1.bf16.msra.mxu0 %v1647_v38  ;;  %v1058_v38 = vand.u32 1, %v1820_v23 }
  0x78   :  { %1010 = vmatpush1.bf16.msra.mxu1 %v1650_v39  ;;  %968 = vmatprep.subr.bf16.mxu0 %v1655_v41  ;;  %v1059_v39 = vand.u32 1, %v1823_v29  ;;  %v1063_v41 = vand.u32 2, %v1823_v29 }
  0x79   :  { %1011 = vmatprep.subr.bf16.mxu1 %v1658_v42  ;;  %vm1831_vm2 = vcmp.ne.s32.totalorder %v1058_v38, 0 }
  0x7a   :  { %vm1835_vm3 = vcmp.ne.s32.totalorder %v1059_v39, 0  ;;  %vm1843_vm5 = vcmp.ne.s32.totalorder %v1063_v41, 0  ;;  %vm1066_vm6 = vmxor %vm1831_vm2, %vm1839_vm4 }
  0x7b   :  { %969 = vmatpush1.bf16.msra.mxu0 %v1653_v44  ;;  %vm1067_vm7 = vmxor %vm1835_vm3, %vm1843_vm5 }
  0x7c   :  { %1012 = vmatpush1.bf16.msra.mxu1 %v1656_v45  ;;  %970 = vmatprep.subr.bf16.mxu0 %v1661_v46  ;;  %vm1874_vm9 = vmxor %vm1066_vm6, %vm1779_vm8 }
  0x7d   :  { %1013 = vmatprep.subr.bf16.mxu1 %v1664_v47  ;;  %vm1892_vm10 = vmxor %vm1067_vm7, %vm1779_vm8 }
  0x7f   :  { %971 = vmatpush2.bf16.msra.mxu0 %v1659_v48 }
  0x80   :  { %1014 = vmatpush2.bf16.msra.mxu1 %v1662_v49  ;;  %972 = vmatprep.subr.bf16.mxu0 %v1667_v50 }
  0x81   :  { %1015 = vmatprep.subr.bf16.mxu1 %v1670_v51 }
  0x83   :  { %973 = vmatpush2.bf16.msra.mxu0 %v1665_v52 }
  0x84   :  { %1016 = vmatpush2.bf16.msra.mxu1 %v1668_v53  ;;  %974 = vmatprep.subr.bf16.mxu0 %v1673_v54 }
  0x85   :  { %1017 = vmatprep.subr.bf16.mxu1 %v1676_v55 }
  0x87   :  { %975 = vmatpush2.bf16.msra.mxu0 %v1671_v56 }
  0x88   :  { %1018 = vmatpush2.bf16.msra.mxu1 %v1674_v57  ;;  %976 = vmatprep.subr.bf16.mxu0 %v1679_v58 }
  0x89   :  { %1019 = vmatprep.subr.bf16.mxu1 %v1682_v59 }
  0x8b   :  { %977 = vmatpush2.bf16.msra.mxu0 %v1677_v60 }
  0x8c   :  { %1020 = vmatpush2.bf16.msra.mxu1 %v1680_v61  ;;  %978 = vmatprep.subr.bf16.mxu0 %v1685_v62 }
  0x8d   :  { %1021 = vmatprep.subr.bf16.mxu1 %v1688_v63 }
  0x8f   :  { %979 = vmatpush2.bf16.msra.mxu0 %v1683_v0 }
  0x90   :  { %1022 = vmatpush2.bf16.msra.mxu1 %v1686_v1  ;;  %980 = vmatprep.subr.bf16.mxu0 %v1691_v2 }
  0x91   :  { %1023 = vmatprep.subr.bf16.mxu1 %v1694_v3  ;;  %v1112_v3 = vand.u32 4, %v1820_v23 }
  0x93   :  { %981 = vmatpush2.bf16.msra.mxu0 %v1689_v4  ;;  %v1113_v4 = vand.u32 4, %v1823_v29  ;;  %vm1896_vm11 = vcmp.ne.s32.totalorder %v1112_v3, 0 }
  0x94   :  { %1024 = vmatpush2.bf16.msra.mxu1 %v1692_v5  ;;  %982 = vmatprep.subr.bf16.mxu0 %v1697_v6  ;;  %vm1116_vm15 = vmxor %vm1839_vm4, %vm1896_vm11 }
  0x95   :  { %1025 = vmatprep.subr.bf16.mxu1 %v1700_v7  ;;  %vm1900_vm12 = vcmp.ne.s32.totalorder %v1113_v4, 0  ;;  %vm1118_vm7 = vmxor %vm1116_vm15, %vm1779_vm8 }
  0x96   :  { %vm1117_vm6 = vmxor %vm1843_vm5, %vm1900_vm12 }
  0x97   :  { %983 = vmatpush2.bf16.msra.mxu0 %v1695_v8  ;;  %vm1163_vm15 = vmxor %vm1835_vm3, %vm1900_vm12 }
  0x98   :  { %1026 = vmatpush2.bf16.msra.mxu1 %v1698_v9  ;;  %984 = vmatprep.subr.bf16.mxu0 %v1703_v10 }
  0x99   :  { %1027 = vmatprep.subr.bf16.mxu1 %v1706_v11 }
  0x9b   :  { %985 = vmatpush2.bf16.msra.mxu0 %v1701_v12 }
  0x9c   :  { %1028 = vmatpush2.bf16.msra.mxu1 %v1704_v13 }
  0x9e   :  { %987 = vmatmul.mubr.bf16.vlgmr.msra.gmra.mxu0 %v1374_v14 }
  0x9f   :  { %1030 = vmatmul.mubr.bf16.vlgmr.msra.gmra.mxu1 %v1376_v15 }
 0x11e   :  { %v902_v16 = vpop.f32.mrf.mxu0 }
 0x11f   :  { %v945_v17 = vpop.f32.mrf.mxu1 }
 0x120   :  { %v904_v18 = vpop.f32.mrf.mxu0  ;;  %v946_v26 = vadd.f32 %v945_v17, %v902_v16 }
 0x121   :  { %v947_v19 = vpop.f32.mrf.mxu1 }
 0x122   :  { %v906_v21 = vpop.f32.mrf.mxu0  ;;  %v948_v30 = vadd.f32 %v947_v19, %v904_v18 }
 0x123   :  { %v949_v22 = vpop.f32.mrf.mxu1 }
 0x124   :  { %v908_v24 = vpop.f32.mrf.mxu0  ;;  %v950_v34 = vadd.f32 %v949_v22, %v906_v21 }
 0x125   :  { %v951_v25 = vpop.f32.mrf.mxu1 }
 0x126   :  { %v952_v42 = vadd.f32 %v951_v25, %v908_v24 }
 0x15e   :  { %v988_v27 = vpop.f32.mrf.mxu0 }
 0x15f   :  { %v1031_v28 = vpop.f32.mrf.mxu1  ;;  %v989_v31 = vadd.f32 %v988_v27, %v946_v26 }
 0x160   :  { %v990_v32 = vpop.f32.mrf.mxu0 }
 0x161   :  { %v1033_v33 = vpop.f32.mrf.mxu1  ;;  %v991_v35 = vadd.f32 %v990_v32, %v948_v30  ;;  %v1032_v43 = vadd.f32 %v1031_v28, %v989_v31 }
 0x162   :  { %v992_v36 = vpop.f32.mrf.mxu0 }
 0x163   :  { %v1035_v37 = vpop.f32.mrf.mxu1  ;;  %v993_v44 = vadd.f32 %v992_v36, %v950_v34  ;;  %v1034_v45 = vadd.f32 %v1033_v33, %v991_v35  ;;  %v1070_v54 = vrot.slane %v1032_v43, 1  ;;  %v1079_v58 = vrot.slane %v1032_v43, 7 }
 0x164   :  { %v994_v46 = vpop.f32.mrf.mxu0 }
 0x165   :  { %v1036_v47 = vadd.f32 %v1035_v37, %v993_v44  ;;  %v995_v48 = vadd.f32 %v994_v46, %v952_v42  ;;  %v1037_v49 = vpop.f32.mrf.mxu1  ;;  %v1071_v59 = vrot.slane %v1034_v45, 1  ;;  %v1080_v60 = vrot.slane %v1034_v45, 7 }
 0x167   :  { %v1072_v55 = vrot.slane %v1036_v47, 1  ;;  %v1081_v56 = vrot.slane %v1036_v47, 7  ;;  %v1038_v57 = vadd.f32 %v1037_v49, %v995_v48 }
 0x169   :  { %v1073_v61 = vrot.slane %v1038_v57, 1  ;;  %v1082_v62 = vrot.slane %v1038_v57, 7  ;;  %v1075_v63 = vsel %vm1074_vm0, %v1070_v54, %v1072_v55  ;;  %v1077_v0 = vsel %vm1074_vm0, %v1072_v55, %v1070_v54 }
 0x16a   :  { %v1084_v1 = vsel %vm1083_vm1, %v1079_v58, %v1081_v56  ;;  %v1086_v2 = vsel %vm1083_vm1, %v1081_v56, %v1079_v58 }
 0x16b   :  { %v1076_v5 = vsel %vm1074_vm0, %v1071_v59, %v1073_v61  ;;  %v1078_v6 = vsel %vm1074_vm0, %v1073_v61, %v1071_v59  ;;  %v1085_v7 = vsel %vm1083_vm1, %v1080_v60, %v1082_v62  ;;  %v1087_v8 = vsel %vm1083_vm1, %v1082_v62, %v1080_v60 }
 0x16c   :  { %v1092_v10 = vsel %vm1831_vm2, %v1086_v2, %v1075_v63  ;;  %v1093_v11 = vsel %vm1831_vm2, %v1087_v8, %v1076_v5  ;;  %v1094_v12 = vsel %vm1835_vm3, %v1084_v1, %v1077_v0  ;;  %v1095_v13 = vsel %vm1835_vm3, %v1085_v7, %v1078_v6 }
 0x16d   :  { %v1096_v15 = vmin.f32 %v1032_v43, %v1092_v10  ;;  %v1097_v16 = vmin.f32 %v1034_v45, %v1093_v11  ;;  %v1098_v17 = vmin.f32 %v1036_v47, %v1094_v12  ;;  %v1099_v18 = vmin.f32 %v1038_v57, %v1095_v13 }
 0x16e   :  { %v1100_v19 = vmax.f32 %v1032_v43, %v1092_v10  ;;  %v1101_v21 = vmax.f32 %v1034_v45, %v1093_v11  ;;  %v1102_v22 = vmax.f32 %v1036_v47, %v1094_v12  ;;  %v1103_v24 = vmax.f32 %v1038_v57, %v1095_v13 }
 0x170   :  { %v1108_v27 = vsel %vm1874_vm9, %v1096_v15, %v1100_v19  ;;  %v1109_v28 = vsel %vm1874_vm9, %v1097_v16, %v1101_v21  ;;  %v1110_v29 = vsel %vm1892_vm10, %v1098_v17, %v1102_v22  ;;  %v1111_v30 = vsel %vm1892_vm10, %v1099_v18, %v1103_v24  ;;  %vm1119_vm9 = vmxor %vm1117_vm6, %vm1779_vm8 }
 0x171   :  { %v1120_v31 = vrot.slane %v1108_v27, 2  ;;  %v1121_v32 = vrot.slane %v1109_v28, 2  ;;  %v1122_v33 = vrot.slane %v1110_v29, 2  ;;  %v1123_v34 = vrot.slane %v1111_v30, 2  ;;  %vm1162_vm10 = vmxor %vm1831_vm2, %vm1896_vm11 }
 0x172   :  { %v1129_v35 = vrot.slane %v1108_v27, 6  ;;  %v1130_v36 = vrot.slane %v1109_v28, 6  ;;  %v1131_v37 = vrot.slane %v1110_v29, 6  ;;  %v1132_v38 = vrot.slane %v1111_v30, 6  ;;  %vm1973_vm6 = vmxor %vm1162_vm10, %vm1779_vm8 }
 0x173   :  { %v1125_v39 = vsel %vm1124_vm13, %v1120_v31, %v1122_v33  ;;  %v1126_v40 = vsel %vm1124_vm13, %v1121_v32, %v1123_v34  ;;  %v1127_v41 = vsel %vm1124_vm13, %v1122_v33, %v1120_v31  ;;  %v1128_v42 = vsel %vm1124_vm13, %v1123_v34, %v1121_v32  ;;  %vm1202_vm10 = vmxor %vm1896_vm11, %vm1779_vm8 }
 0x174   :  { %v1134_v43 = vsel %vm1133_vm14, %v1129_v35, %v1131_v37  ;;  %v1135_v44 = vsel %vm1133_vm14, %v1130_v36, %v1132_v38  ;;  %v1136_v45 = vsel %vm1133_vm14, %v1131_v37, %v1129_v35  ;;  %v1137_v46 = vsel %vm1133_vm14, %v1132_v38, %v1130_v36 }
 0x175   :  { %v1142_v47 = vsel %vm1839_vm4, %v1136_v45, %v1125_v39  ;;  %v1143_v48 = vsel %vm1839_vm4, %v1137_v46, %v1126_v40  ;;  %v1144_v49 = vsel %vm1843_vm5, %v1134_v43, %v1127_v41  ;;  %v1145_v54 = vsel %vm1843_vm5, %v1135_v44, %v1128_v42 }
 0x176   :  { %v1146_v55 = vmin.f32 %v1108_v27, %v1142_v47  ;;  %v1147_v56 = vmin.f32 %v1109_v28, %v1143_v48  ;;  %v1148_v57 = vmin.f32 %v1110_v29, %v1144_v49  ;;  %v1149_v58 = vmin.f32 %v1111_v30, %v1145_v54 }
 0x177   :  { %v1150_v59 = vmax.f32 %v1108_v27, %v1142_v47  ;;  %v1151_v60 = vmax.f32 %v1109_v28, %v1143_v48  ;;  %v1152_v61 = vmax.f32 %v1110_v29, %v1144_v49  ;;  %v1153_v62 = vmax.f32 %v1111_v30, %v1145_v54 }
 0x179   :  { %v1158_v63 = vsel %vm1118_vm7, %v1146_v55, %v1150_v59  ;;  %v1159_v0 = vsel %vm1118_vm7, %v1147_v56, %v1151_v60  ;;  %v1160_v1 = vsel %vm1119_vm9, %v1148_v57, %v1152_v61  ;;  %v1161_v2 = vsel %vm1119_vm9, %v1149_v58, %v1153_v62  ;;  %vm1165_vm7 = vmxor %vm1163_vm15, %vm1779_vm8 }
 0x17a   :  { %v1166_v3 = vrot.slane %v1158_v63, 1  ;;  %v1167_v4 = vrot.slane %v1159_v0, 1  ;;  %v1168_v5 = vrot.slane %v1160_v1, 1  ;;  %v1169_v6 = vrot.slane %v1161_v2, 1  ;;  %vm1203_vm15 = vmxor %vm1900_vm12, %vm1779_vm8 }
 0x17b   :  { %v1174_v7 = vrot.slane %v1158_v63, 7  ;;  %v1175_v8 = vrot.slane %v1159_v0, 7  ;;  %v1176_v9 = vrot.slane %v1160_v1, 7  ;;  %v1177_v10 = vrot.slane %v1161_v2, 7 }
 0x17c   :  { %v1170_v11 = vsel %vm1074_vm0, %v1166_v3, %v1168_v5  ;;  %v1171_v12 = vsel %vm1074_vm0, %v1167_v4, %v1169_v6  ;;  %v1172_v13 = vsel %vm1074_vm0, %v1168_v5, %v1166_v3  ;;  %v1173_v14 = vsel %vm1074_vm0, %v1169_v6, %v1167_v4 }
 0x17d   :  { %v1178_v15 = vsel %vm1083_vm1, %v1174_v7, %v1176_v9  ;;  %v1179_v16 = vsel %vm1083_vm1, %v1175_v8, %v1177_v10  ;;  %v1180_v17 = vsel %vm1083_vm1, %v1176_v9, %v1174_v7  ;;  %v1181_v18 = vsel %vm1083_vm1, %v1177_v10, %v1175_v8 }
 0x17e   :  { %v1182_v21 = vsel %vm1831_vm2, %v1180_v17, %v1170_v11  ;;  %v1183_v22 = vsel %vm1831_vm2, %v1181_v18, %v1171_v12  ;;  %v1184_v24 = vsel %vm1835_vm3, %v1178_v15, %v1172_v13  ;;  %v1185_v27 = vsel %vm1835_vm3, %v1179_v16, %v1173_v14 }
 0x17f   :  { %v1186_v28 = vmin.f32 %v1158_v63, %v1182_v21  ;;  %v1187_v29 = vmin.f32 %v1159_v0, %v1183_v22  ;;  %v1188_v30 = vmin.f32 %v1160_v1, %v1184_v24  ;;  %v1189_v31 = vmin.f32 %v1161_v2, %v1185_v27 }
 0x180   :  { %v1190_v32 = vmax.f32 %v1158_v63, %v1182_v21  ;;  %v1191_v33 = vmax.f32 %v1159_v0, %v1183_v22  ;;  %v1192_v34 = vmax.f32 %v1160_v1, %v1184_v24  ;;  %v1193_v35 = vmax.f32 %v1161_v2, %v1185_v27 }
 0x181   :  { %vm1208_vm9 = vcmp.lt.s32.totalorder %v1820_v23, 4 }
 0x182   :  { %v1198_v36 = vsel %vm1973_vm6, %v1186_v28, %v1190_v32  ;;  %v1199_v37 = vsel %vm1973_vm6, %v1187_v29, %v1191_v33  ;;  %v1200_v38 = vsel %vm1165_vm7, %v1188_v30, %v1192_v34  ;;  %v1201_v39 = vsel %vm1165_vm7, %v1189_v31, %v1193_v35 }
 0x183   :  { %v1204_v40 = vrot.slane %v1198_v36, 4  ;;  %v1205_v41 = vrot.slane %v1199_v37, 4  ;;  %v1206_v42 = vrot.slane %v1200_v38, 4  ;;  %v1207_v43 = vrot.slane %v1201_v39, 4 }
 0x185   :  { %v1209_v44 = vsel %vm1208_vm9, %v1204_v40, %v1206_v42  ;;  %v1210_v45 = vsel %vm1208_vm9, %v1205_v41, %v1207_v43  ;;  %v1211_v46 = vsel %vm1208_vm9, %v1206_v42, %v1204_v40  ;;  %v1212_v47 = vsel %vm1208_vm9, %v1207_v43, %v1205_v41 }
 0x186   :  { %v1217_v48 = vsel %vm1896_vm11, %v1211_v46, %v1209_v44  ;;  %v1218_v49 = vsel %vm1896_vm11, %v1212_v47, %v1210_v45  ;;  %v1219_v54 = vsel %vm1900_vm12, %v1209_v44, %v1211_v46  ;;  %v1220_v55 = vsel %vm1900_vm12, %v1210_v45, %v1212_v47  ;;  %vm1237_vm11 = vmxor %vm1839_vm4, %vm1779_vm8 }
 0x187   :  { %v1221_v56 = vmin.f32 %v1198_v36, %v1217_v48  ;;  %v1222_v57 = vmin.f32 %v1199_v37, %v1218_v49  ;;  %v1223_v58 = vmin.f32 %v1200_v38, %v1219_v54  ;;  %v1224_v59 = vmin.f32 %v1201_v39, %v1220_v55  ;;  %vm1238_vm12 = vmxor %vm1843_vm5, %vm1779_vm8 }
 0x188   :  { %v1225_v60 = vmax.f32 %v1198_v36, %v1217_v48  ;;  %v1226_v61 = vmax.f32 %v1199_v37, %v1218_v49  ;;  %v1227_v62 = vmax.f32 %v1200_v38, %v1219_v54  ;;  %v1228_v63 = vmax.f32 %v1201_v39, %v1220_v55 }
 0x18a   :  { %v1233_v25 = vsel %vm1202_vm10, %v1221_v56, %v1225_v60  ;;  %v1234_v0 = vsel %vm1202_vm10, %v1222_v57, %v1226_v61  ;;  %v1235_v1 = vsel %vm1203_vm15, %v1223_v58, %v1227_v62  ;;  %v1236_v2 = vsel %vm1203_vm15, %v1224_v59, %v1228_v63 }
 0x18b   :  { %v1239_v3 = vrot.slane %v1233_v25, 2  ;;  %v1240_v4 = vrot.slane %v1234_v0, 2  ;;  %v1241_v5 = vrot.slane %v1235_v1, 2  ;;  %v1242_v6 = vrot.slane %v1236_v2, 2 }
 0x18c   :  { %v1247_v7 = vrot.slane %v1233_v25, 6  ;;  %v1248_v8 = vrot.slane %v1234_v0, 6  ;;  %v1249_v26 = vrot.slane %v1235_v1, 6  ;;  %v1250_v9 = vrot.slane %v1236_v2, 6 }
 0x18d   :  { %v1243_v10 = vsel %vm1124_vm13, %v1239_v3, %v1241_v5  ;;  %v1244_v11 = vsel %vm1124_vm13, %v1240_v4, %v1242_v6  ;;  %v1245_v12 = vsel %vm1124_vm13, %v1241_v5, %v1239_v3  ;;  %v1246_v13 = vsel %vm1124_vm13, %v1242_v6, %v1240_v4 }
 0x18e   :  { %v1251_v14 = vsel %vm1133_vm14, %v1247_v7, %v1249_v26  ;;  %v1252_v15 = vsel %vm1133_vm14, %v1248_v8, %v1250_v9  ;;  %v1253_v16 = vsel %vm1133_vm14, %v1249_v26, %v1247_v7  ;;  %v1254_v17 = vsel %vm1133_vm14, %v1250_v9, %v1248_v8 }
 0x18f   :  { %v1255_v18 = vsel %vm1839_vm4, %v1253_v16, %v1243_v10  ;;  %v1256_v19 = vsel %vm1839_vm4, %v1254_v17, %v1244_v11  ;;  %v1257_v21 = vsel %vm1843_vm5, %v1251_v14, %v1245_v12  ;;  %v1258_v22 = vsel %vm1843_vm5, %v1252_v15, %v1246_v13  ;;  %vm1275_vm4 = vmxor %vm1831_vm2, %vm1779_vm8 }
 0x190   :  { %v1259_v24 = vmin.f32 %v1233_v25, %v1255_v18  ;;  %v1260_v27 = vmin.f32 %v1234_v0, %v1256_v19  ;;  %v1261_v28 = vmin.f32 %v1235_v1, %v1257_v21  ;;  %v1262_v29 = vmin.f32 %v1236_v2, %v1258_v22 }
 0x191   :  { %v1263_v30 = vmax.f32 %v1233_v25, %v1255_v18  ;;  %v1264_v31 = vmax.f32 %v1234_v0, %v1256_v19  ;;  %v1265_v32 = vmax.f32 %v1235_v1, %v1257_v21  ;;  %v1266_v33 = vmax.f32 %v1236_v2, %v1258_v22 }
 0x192   :  { %v1780_v14 = vmov 1966171168  }
 0x193   :  { %v1271_v52 = vsel %vm1237_vm11, %v1259_v24, %v1263_v30  ;;  %v1272_v34 = vsel %vm1237_vm11, %v1260_v27, %v1264_v31  ;;  %v1273_v35 = vsel %vm1238_vm12, %v1261_v28, %v1265_v32  ;;  %v1274_v36 = vsel %vm1238_vm12, %v1262_v29, %v1266_v33 }
 0x194   :  { %v1277_v37 = vrot.slane %v1271_v52, 1  ;;  %v1278_v38 = vrot.slane %v1272_v34, 1  ;;  %v1279_v39 = vrot.slane %v1273_v35, 1  ;;  %v1280_v40 = vrot.slane %v1274_v36, 1 }
 0x195   :  { %v1285_v41 = vrot.slane %v1271_v52, 7  ;;  %v1286_v42 = vrot.slane %v1272_v34, 7  ;;  %v1287_v53 = vrot.slane %v1273_v35, 7  ;;  %v1288_v43 = vrot.slane %v1274_v36, 7 }
 0x196   :  { %v1281_v44 = vsel %vm1074_vm0, %v1277_v37, %v1279_v39  ;;  %v1282_v45 = vsel %vm1074_vm0, %v1278_v38, %v1280_v40  ;;  %v1283_v46 = vsel %vm1074_vm0, %v1279_v39, %v1277_v37  ;;  %v1284_v47 = vsel %vm1074_vm0, %v1280_v40, %v1278_v38  ;;  %vm1276_vm0 = vmxor %vm1835_vm3, %vm1779_vm8 }
 0x197   :  { %v1289_v48 = vsel %vm1083_vm1, %v1285_v41, %v1287_v53  ;;  %v1290_v49 = vsel %vm1083_vm1, %v1286_v42, %v1288_v43  ;;  %v1291_v54 = vsel %vm1083_vm1, %v1287_v53, %v1285_v41  ;;  %v1292_v55 = vsel %vm1083_vm1, %v1288_v43, %v1286_v42 }
 0x198   :  { %v1293_v56 = vsel %vm1831_vm2, %v1291_v54, %v1281_v44  ;;  %v1294_v57 = vsel %vm1831_vm2, %v1292_v55, %v1282_v45  ;;  %v1295_v58 = vsel %vm1835_vm3, %v1289_v48, %v1283_v46  ;;  %v1296_v59 = vsel %vm1835_vm3, %v1290_v49, %v1284_v47 }
 0x199   :  { %v1297_v60 = vmin.f32 %v1271_v52, %v1293_v56  ;;  %v1298_v61 = vmin.f32 %v1272_v34, %v1294_v57  ;;  %v1299_v62 = vmin.f32 %v1273_v35, %v1295_v58  ;;  %v1300_v63 = vmin.f32 %v1274_v36, %v1296_v59 }
 0x19a   :  { %v1301_v25 = vmax.f32 %v1271_v52, %v1293_v56  ;;  %v1302_v0 = vmax.f32 %v1272_v34, %v1294_v57  ;;  %v1303_v1 = vmax.f32 %v1273_v35, %v1295_v58  ;;  %v1304_v2 = vmax.f32 %v1274_v36, %v1296_v59 }
 0x19b   :  { %v1335_v15 = vunpack.c.l.s4 %v1780_v14  ;;  %vm1351_vm1 = vcmp.lt.s32.totalorder %v1055_v20, 256 }
 0x19c   :  { %v1309_v50 = vsel %vm1275_vm4, %v1297_v60, %v1301_v25  ;;  %v1310_v3 = vsel %vm1275_vm4, %v1298_v61, %v1302_v0  ;;  %v1311_v4 = vsel %vm1276_vm0, %v1299_v62, %v1303_v1  ;;  %v1312_v5 = vsel %vm1276_vm0, %v1300_v63, %v1304_v2 }
 0x19d   :  { %v1313_v6 = vsub.f32 %v1309_v50, %v1311_v4  ;;  %v1314_v7 = vsub.f32 %v1310_v3, %v1312_v5  ;;  %v1336_v21 = vunpack.c.0.s8 %v1335_v15 }
 0x19f   :  { %v1315_v8 = vand.u32 2147483647, %v1313_v6  ;;  %v1316_v26 = vand.u32 2147483647, %v1314_v7  ;;  %v1339_v29 = vsub.s32 %v1336_v21, %v1820_v23 }
 0x1a1   :  { %v1317_v9 = vmul.f32 %v1315_v8, %v1315_v8  ;;  %v1318_v10 = vmul.f32 %v1316_v26, %v1316_v26 }
 0x1a3   :  { %v1319_v51 = vrot.slane %v1317_v9, 4  ;;  %v1325_v11 = vrot.slane %v1318_v10, 4 }
 0x1a5   :  { %v1320_v12 = vadd.f32 %v1319_v51, %v1317_v9  ;;  %v1326_v13 = vadd.f32 %v1325_v11, %v1318_v10 }
 0x1a7   :  { %v1321_v16 = vrot.slane %v1320_v12, 2  ;;  %v1327_v17 = vrot.slane %v1326_v13, 2 }
 0x1a9   :  { %v1322_v18 = vadd.f32 %v1321_v16, %v1320_v12  ;;  %v1328_v19 = vadd.f32 %v1327_v17, %v1326_v13 }
 0x1ab   :  { %v1323_v22 = vrot.slane %v1322_v18, 1  ;;  %v1329_v24 = vrot.slane %v1328_v19, 1 }
 0x1ad   :  { %v1324_v27 = vadd.f32 %v1323_v22, %v1322_v18  ;;  %v1330_v28 = vadd.f32 %v1329_v24, %v1328_v19 }
 0x1af   :  { %v1333_v30 = vcombine.low %v1324_v27, %v1330_v28 }
 0x1b1   :  { %v1340_v31 = vrot.slane %v1333_v30, %v1339_v29 }
 0x1b3   :  { %v1347_v32 = vrot.slane %v1340_v31, %v1339_v29 }
 0x1b5   :  { %1353 = vst.msk [vmem:[#allocation8] sm:$0x3] %vm1351_vm1, %v1347_v32 }
 0x1b6   :  { %1758 = shalt.err (!%p1755_p0)
}
 0x1b7   :  { %1363 = dma.vmem_to_hbm [thread:$0]  %s1361_s1, 32, %s2072_s2, [#allocation5]  }
 0x1b8   :  { %1771 = dma.done.wait [#allocation5], 32  }
 0x1b9   :  { %1772 = vsyncadd [#allocation5], 4294967264 }
 0x1ba   :  { %1367 = vsyncpa [#allocation4], 1 }
 0x1bb   :  { %1368 = vsyncpa [#allocation7], 1 }
 0x1bc   :  { %1369 = vsyncpa [#allocation5], 1 }

</bundles_post_ra>
